<compile_context>
chip_gen: v6e
topology: v6e:2x2x1
jax: 0.10.0
libtpu: 0.0.40
codegen_flags: <defaults>
</compile_context>

<pallas_src>
import functools

import jax
import jax.numpy as jnp
from jax import lax
from jax.experimental import pallas as pl
from jax.experimental.pallas import tpu as pltpu

ALPHA = 10          # must stay an even integer for the trace-power identity used below
EPS = 1e-08
SIGMA_MIN = 1e-4


def _round_up(v, m):
    return ((v + m - 1) // m) * m


# --------------------------------------------------------------------------------------
# Kernel 1: fused pairwise distance + exp + trace normalization + padding mask.
# --------------------------------------------------------------------------------------
def _gram_kernel(n_valid, n_pad, scale, inv_ref, xi_ref, xj_ref, o_ref):
    """One (tile, tile) block of K = exp(-||x_i - x_j||^2 / sigma^2) / (n + eps)."""
    tile = o_ref.shape[0]
    # xi rows are [x_i, |x_i|^2, 1, 0...]; xj rows are [-2*x_j, 1, |x_j|^2, 0...]:
    # a single MXU contraction over the augmented feature axis yields d2_ij directly
    # (no lane-width-1 norm streams, no sublane->lane broadcasts).
    d2 = lax.dot_general(
        xi_ref[...], xj_ref[...],
        dimension_numbers=(((1,), (1,)), ((), ())),
        preferred_element_type=jnp.float32)
    k = jnp.exp(-d2 * inv_ref[0, 0]) * scale               # fused gram + 1/(n+eps)
    if n_valid < n_pad:                                     # static branch: mask padded rows/cols
        rows = lax.broadcasted_iota(jnp.int32, (tile, tile), 0) + pl.program_id(0) * tile
        cols = lax.broadcasted_iota(jnp.int32, (tile, tile), 1) + pl.program_id(1) * tile
        k = jnp.where((rows < n_valid) & (cols < n_valid), k, 0.0)
    o_ref[...] = k


def _max_tile_for_device():
    try:
        kind = jax.devices()[0].device_kind.lower()
    except Exception:
        return 256
    if "v5 lite" in kind or "v5e" in kind or "v5lite" in kind:
        return 128   # v5e: single vst slot + ~820 GB/s HBM -> store-bound, keep output tiles small
    return 512       # v6e/v7x: bigger tiles amortize per-step overhead; VMEM footprint stays tiny


def _pick_tile(n_pad, f_pad):
    cap = _max_tile_for_device()
    for t in (512, 256, 128):
        if t > cap or n_pad % t != 0:
            continue
        vmem = 2 * (2 * t * f_pad * 4) + 2 * (t * t * 4)    # double-buffered inputs + output
        if vmem <= 24 * 1024 * 1024:
            return t
    return 128


def _pairwise_gram_pallas(x, inv_sig2):
    """Normalized gram exp(-||x_i-x_j||^2 * inv_sig2)/(n+eps), zero-padded to [n_pad, n_pad]."""
    n, f = x.shape
    n_pad = _round_up(n, 128)
    f_pad = _round_up(f + 2, 128)                           # room for the two augmented columns
    tile = _pick_tile(n_pad, f_pad)

    sq = jnp.sum(x * x, axis=-1)                            # |x_i|^2 (O(N*F), stays in XLA)

    xi = jnp.zeros((n_pad, f_pad), jnp.float32)
    xi = xi.at[:n, :f].set(x)
    xi = xi.at[:n, f].set(sq)
    xi = xi.at[:n, f + 1].set(1.0)

    xj = jnp.zeros((n_pad, f_pad), jnp.float32)
    xj = xj.at[:n, :f].set(-2.0 * x)
    xj = xj.at[:n, f].set(1.0)
    xj = xj.at[:n, f + 1].set(sq)

    inv = jnp.reshape(inv_sig2.astype(jnp.float32), (1, 1))
    scale = 1.0 / (float(n) + EPS)                          # trace(K) == n analytically

    kernel = functools.partial(_gram_kernel, n, n_pad, scale)
    grid = (n_pad // tile, n_pad // tile)

    return pl.pallas_call(
        kernel,
        out_shape=jax.ShapeDtypeStruct((n_pad, n_pad), jnp.float32),
        grid=grid,
        in_specs=[
            pl.BlockSpec(memory_space=pltpu.MemorySpace.SMEM),   # 1/sigma^2 scalar
            pl.BlockSpec((tile, f_pad), lambda i, j: (i, 0)),    # augmented row tile
            pl.BlockSpec((tile, f_pad), lambda i, j: (j, 0)),    # augmented col tile
        ],
        out_specs=pl.BlockSpec((tile, tile), lambda i, j: (i, j)),
        compiler_params=pltpu.CompilerParams(
            dimension_semantics=("parallel", "parallel")),
    )(inv, xi, xj)


# --------------------------------------------------------------------------------------
# Kernel 2: tiled MXU matmul (used for the K -> K^2 -> K^4 -> K^5 trace-power chain).
# --------------------------------------------------------------------------------------
def _matmul_kernel(a_ref, b_ref, o_ref, acc_ref):
    @pl.when(pl.program_id(2) == 0)
    def _():
        acc_ref[...] = jnp.zeros_like(acc_ref)
    acc_ref[...] += jnp.dot(a_ref[...], b_ref[...], preferred_element_type=jnp.float32)
    o_ref[...] = acc_ref[...].astype(o_ref.dtype)


def _matmul_pallas(a, b):
    m, k = a.shape
    k2, n = b.shape
    assert k == k2
    t = 256 if (m % 256 == 0 and n % 256 == 0 and k % 256 == 0) else 128
    return pl.pallas_call(
        _matmul_kernel,
        out_shape=jax.ShapeDtypeStruct((m, n), jnp.float32),
        grid=(m // t, n // t, k // t),
        in_specs=[pl.BlockSpec((t, t), lambda i, j, l: (i, l)),
                  pl.BlockSpec((t, t), lambda i, j, l: (l, j))],
        out_specs=pl.BlockSpec((t, t), lambda i, j, l: (i, j)),
        scratch_shapes=[pltpu.VMEM((t, t), jnp.float32)],
        compiler_params=pltpu.CompilerParams(
            dimension_semantics=("parallel", "parallel", "arbitrary")),
    )(a, b)


# --------------------------------------------------------------------------------------
# Wrapper.
# --------------------------------------------------------------------------------------
def _bandwidth_sigma(x):
    """sigma = max(1e-4, mean(sorted Euclidean distances to the first 10 samples)).

    Matches np.mean(np.mean(np.sort(k[:, :10], 1))) since the mean is sort-invariant.
    Only an N x min(10, N) slab is needed, so this stays in plain JAX.
    """
    n = x.shape[0]
    m = min(10, n)
    xm = x[:m]
    sq = jnp.sum(x * x, axis=-1)
    d2 = (sq[:, None] + sq[:m][None, :]
          - 2.0 * jnp.dot(x, xm.T, precision=lax.Precision.HIGHEST))
    d = jnp.sqrt(jnp.maximum(d2, 0.0))
    sigma = jnp.mean(d)
    return jnp.maximum(sigma, SIGMA_MIN)


@jax.jit
def renyi_entropy_loss(x):
    """Forward pass of RenyiEntropyLoss for a 2-D input [N, F]."""
    x = x.astype(jnp.float32)
    sigma = lax.stop_gradient(_bandwidth_sigma(x))          # torch.no_grad() block
    inv_sig2 = 1.0 / (sigma * sigma)                        # renyi_entropy(x, sigma=sigma**2)

    # Pallas: fused distance + exp + 1/(n+eps) normalization + padding mask.
    k = _pairwise_gram_pallas(x, inv_sig2)

    # TODO(synk): there is no Pallas/Mosaic symmetric eigensolver; since ALPHA == 10 is even,
    # sum(|eig|^ALPHA) == trace(K^10) == ||K^5||_F^2 exactly, so the eigendecomposition is
    # replaced by three Pallas MXU matmuls (padded zero rows/cols only add zero eigenvalues).
    k2 = _matmul_pallas(k, k)
    k4 = _matmul_pallas(k2, k2)
    k5 = _matmul_pallas(k4, k)
    eig_pow_sum = jnp.sum(k5 * k5)                          # trace(K^10)

    entropy = (1.0 / (1.0 - ALPHA)) * jnp.log2(eig_pow_sum + EPS)
    return entropy


def _reference(x):
    """Pure-JAX replica of the PyTorch forward (for verification)."""
    x = x.astype(jnp.float32)
    n = x.shape[0]
    m = min(10, n)

    xxt = jnp.dot(x, x.T, precision=lax.Precision.HIGHEST)
    sq = jnp.sum(x * x, axis=-1)
    dist = sq[:, None] + sq[None, :] - 2.0 * xxt                 # squared distances
    d_eu = jnp.sqrt(jnp.maximum(dist, 0.0))                      # squareform(pdist(x))

    sigma = jnp.mean(jnp.sort(d_eu[:, :m], axis=1))
    sigma = jnp.maximum(sigma, SIGMA_MIN)
    sig2 = sigma * sigma

    k = jnp.exp(-dist / sig2)
    k = k / (EPS + jnp.trace(k))
    eigv = jnp.abs(jnp.linalg.eigvalsh(k))
    return (1.0 / (1.0 - ALPHA)) * jnp.log2(jnp.sum(eigv ** ALPHA) + EPS)


if __name__ == "__main__":
    key = jax.random.PRNGKey(0)
    # small 2-D input (the module requires 2-D): 64 samples, 32 features
    x = jax.random.normal(key, (64, 32), dtype=jnp.float32)

    loss = jax.block_until_ready(renyi_entropy_loss(x))
    ref = jax.block_until_ready(_reference(x))

    assert bool(jnp.isfinite(loss)), loss
    # eigvalsh vs trace-power and MXU-precision differences are ~1e-5 relative; the |eig|^10
    # power amplifies tiny rounding, so use a slightly relaxed (but still tight) tolerance.
    assert jnp.allclose(loss, ref, rtol=5e-3, atol=5e-3), (loss, ref)

    print("KERNEL_OK")
</pallas_src>

<mosaic_0001>
module attributes {stable_mosaic.version = 11 : i64} {
  func.func @_gram_kernel(%arg0: i32, %arg1: i32, %arg2: memref<1x1xf32, #tpu.memory_space<smem>>, %arg3: memref<128x128xf32, #tpu.memory_space<vmem>>, %arg4: memref<128x128xf32, #tpu.memory_space<vmem>>, %arg5: memref<128x128xf32, #tpu.memory_space<vmem>>) attributes {dimension_semantics = [#tpu.dimension_semantics<parallel>, #tpu.dimension_semantics<parallel>], iteration_bounds = array<i64: 1, 1>, scalar_prefetch = 0 : i64, scratch_operands = 0 : i64, tpu.core_type = #tpu.core_type<tc>, window_params = [{transform_indices = @transform_0, window_bounds = array<i64: 1, 1>}, {transform_indices = @transform_1, window_bounds = array<i64: 128, 128>}, {transform_indices = @transform_2, window_bounds = array<i64: 128, 128>}, {transform_indices = @transform_3, window_bounds = array<i64: 128, 128>}]} {
    %c0 = arith.constant 0 : index
    %c0_0 = arith.constant 0 : index
    %0 = vector.load %arg3[%c0, %c0_0] : memref<128x128xf32, #tpu.memory_space<vmem>>, vector<128x128xf32>
    %c0_1 = arith.constant 0 : index
    %c0_2 = arith.constant 0 : index
    %1 = vector.load %arg4[%c0_1, %c0_2] : memref<128x128xf32, #tpu.memory_space<vmem>>, vector<128x128xf32>
    %cst = arith.constant dense<0.000000e+00> : vector<128x128xf32>
    %2 = tpu.matmul %0, %1, %cst {dimension_numbers = #tpu.dot_dimension_numbers<[1], [1], [0], [0], [0, 0, 1, 0], [], []>} : vector<128x128xf32>, vector<128x128xf32>, vector<128x128xf32> -> vector<128x128xf32>
    %cst_3 = arith.constant 0.000000e+00 : f32
    %3 = vector.broadcast %cst_3 : f32 to vector<128x128xf32>
    %4 = arith.subf %3, %2 : vector<128x128xf32>
    %c0_4 = arith.constant 0 : index
    %c0_5 = arith.constant 0 : index
    %5 = memref.load %arg2[%c0_4, %c0_5] : memref<1x1xf32, #tpu.memory_space<smem>>
    %6 = vector.broadcast %5 : f32 to vector<128x128xf32>
    %7 = arith.mulf %4, %6 : vector<128x128xf32>
    %8 = math.exp %7 : vector<128x128xf32>
    %cst_6 = arith.constant 1.562500e-02 : f32
    %9 = vector.broadcast %cst_6 : f32 to vector<128x128xf32>
    %10 = arith.mulf %8, %9 : vector<128x128xf32>
    %11 = tpu.iota {dimensions = array<i32: 0>} : vector<128x128xi32>
    %c128_i32 = arith.constant 128 : i32
    %12 = arith.muli %arg0, %c128_i32 : i32
    %13 = vector.broadcast %12 : i32 to vector<128x128xi32>
    %14 = arith.addi %11, %13 : vector<128x128xi32>
    %15 = tpu.iota {dimensions = array<i32: 1>} : vector<128x128xi32>
    %c128_i32_7 = arith.constant 128 : i32
    %16 = arith.muli %arg1, %c128_i32_7 : i32
    %17 = vector.broadcast %16 : i32 to vector<128x128xi32>
    %18 = arith.addi %15, %17 : vector<128x128xi32>
    %c64_i32 = arith.constant 64 : i32
    %19 = vector.broadcast %c64_i32 : i32 to vector<128x128xi32>
    %20 = arith.cmpi slt, %14, %19 : vector<128x128xi32>
    %c64_i32_8 = arith.constant 64 : i32
    %21 = vector.broadcast %c64_i32_8 : i32 to vector<128x128xi32>
    %22 = arith.cmpi slt, %18, %21 : vector<128x128xi32>
    %23 = arith.andi %20, %22 : vector<128x128xi1>
    %cst_9 = arith.constant 0.000000e+00 : f32
    %24 = vector.broadcast %cst_9 : f32 to vector<128x128xf32>
    %25 = arith.select %23, %10, %24 : vector<128x128xi1>, vector<128x128xf32>
    %c0_10 = arith.constant 0 : index
    %c0_11 = arith.constant 0 : index
    %26 = vector.load %arg5[%c0_10, %c0_11] : memref<128x128xf32, #tpu.memory_space<vmem>>, vector<128x128xf32>
    tpu.vector_store %arg5[%c0_10, %c0_11], %25 {strides = array<i32>} : memref<128x128xf32, #tpu.memory_space<vmem>>, vector<128x128xf32>,
    return
  }
  func.func @transform_0(%arg0: i32, %arg1: i32) -> (i32, i32) {
    %c0_i32 = arith.constant 0 : i32
    %c0_i32_0 = arith.constant 0 : i32
    %c0_i32_1 = arith.constant 0 : i32
    return %c0_i32, %c0_i32_0 : i32, i32
  }
  func.func @transform_1(%arg0: i32, %arg1: i32) -> (i32, i32) {
    %c0_i32 = arith.constant 0 : i32
    %c0_i32_0 = arith.constant 0 : i32
    return %arg0, %c0_i32 : i32, i32
  }
  func.func @transform_2(%arg0: i32, %arg1: i32) -> (i32, i32) {
    %c0_i32 = arith.constant 0 : i32
    %c0_i32_0 = arith.constant 0 : i32
    return %arg1, %c0_i32 : i32, i32
  }
  func.func @transform_3(%arg0: i32, %arg1: i32) -> (i32, i32) {
    %c0_i32 = arith.constant 0 : i32
    return %arg0, %arg1 : i32, i32
  }
}

module attributes {stable_mosaic.version = 11 : i64} {
  func.func @_matmul_kernel(%arg0: i32, %arg1: i32, %arg2: i32, %arg3: memref<128x128xf32, #tpu.memory_space<vmem>>, %arg4: memref<128x128xf32, #tpu.memory_space<vmem>>, %arg5: memref<128x128xf32, #tpu.memory_space<vmem>>, %arg6: memref<128x128xf32, #tpu.memory_space<vmem>>) attributes {dimension_semantics = [#tpu.dimension_semantics<parallel>, #tpu.dimension_semantics<parallel>, #tpu.dimension_semantics<arbitrary>], iteration_bounds = array<i64: 1, 1, 1>, scalar_prefetch = 0 : i64, scratch_operands = 1 : i64, tpu.core_type = #tpu.core_type<tc>, window_params = [{transform_indices = @transform_0, window_bounds = array<i64: 128, 128>}, {transform_indices = @transform_1, window_bounds = array<i64: 128, 128>}, {transform_indices = @transform_2, window_bounds = array<i64: 128, 128>}]} {
    %c0_i32 = arith.constant 0 : i32
    %0 = arith.cmpi eq, %arg2, %c0_i32 : i32
    %1 = arith.extui %0 : i1 to i32
    %c0_i32_0 = arith.constant 0 : i32
    %2 = arith.cmpi ne, %1, %c0_i32_0 : i32
    scf.if %2 {
      %cst_12 = arith.constant 0.000000e+00 : f32
      %11 = vector.broadcast %cst_12 : f32 to vector<128x128xf32>
      %c0_13 = arith.constant 0 : index
      %c0_14 = arith.constant 0 : index
      %12 = vector.load %arg6[%c0_13, %c0_14] : memref<128x128xf32, #tpu.memory_space<vmem>>, vector<128x128xf32>
      tpu.vector_store %arg6[%c0_13, %c0_14], %11 {strides = array<i32>} : memref<128x128xf32, #tpu.memory_space<vmem>>, vector<128x128xf32>,
    } else {
    }
    %c0 = arith.constant 0 : index
    %c0_1 = arith.constant 0 : index
    %3 = vector.load %arg6[%c0, %c0_1] : memref<128x128xf32, #tpu.memory_space<vmem>>, vector<128x128xf32>
    %c0_2 = arith.constant 0 : index
    %c0_3 = arith.constant 0 : index
    %4 = vector.load %arg3[%c0_2, %c0_3] : memref<128x128xf32, #tpu.memory_space<vmem>>, vector<128x128xf32>
    %c0_4 = arith.constant 0 : index
    %c0_5 = arith.constant 0 : index
    %5 = vector.load %arg4[%c0_4, %c0_5] : memref<128x128xf32, #tpu.memory_space<vmem>>, vector<128x128xf32>
    %cst = arith.constant dense<0.000000e+00> : vector<128x128xf32>
    %6 = tpu.matmul %4, %5, %cst {dimension_numbers = #tpu.dot_dimension_numbers<[1], [0], [0], [1], [0, 0, 1, 1], [], []>} : vector<128x128xf32>, vector<128x128xf32>, vector<128x128xf32> -> vector<128x128xf32>
    %7 = arith.addf %3, %6 : vector<128x128xf32>
    %c0_6 = arith.constant 0 : index
    %c0_7 = arith.constant 0 : index
    %8 = vector.load %arg6[%c0_6, %c0_7] : memref<128x128xf32, #tpu.memory_space<vmem>>, vector<128x128xf32>
    tpu.vector_store %arg6[%c0_6, %c0_7], %7 {strides = array<i32>} : memref<128x128xf32, #tpu.memory_space<vmem>>, vector<128x128xf32>,
    %c0_8 = arith.constant 0 : index
    %c0_9 = arith.constant 0 : index
    %9 = vector.load %arg6[%c0_8, %c0_9] : memref<128x128xf32, #tpu.memory_space<vmem>>, vector<128x128xf32>
    %c0_10 = arith.constant 0 : index
    %c0_11 = arith.constant 0 : index
    %10 = vector.load %arg5[%c0_10, %c0_11] : memref<128x128xf32, #tpu.memory_space<vmem>>, vector<128x128xf32>
    tpu.vector_store %arg5[%c0_10, %c0_11], %9 {strides = array<i32>} : memref<128x128xf32, #tpu.memory_space<vmem>>, vector<128x128xf32>,
    return
  }
  func.func @transform_0(%arg0: i32, %arg1: i32, %arg2: i32) -> (i32, i32) {
    %c0_i32 = arith.constant 0 : i32
    return %arg0, %arg2 : i32, i32
  }
  func.func @transform_1(%arg0: i32, %arg1: i32, %arg2: i32) -> (i32, i32) {
    %c0_i32 = arith.constant 0 : i32
    return %arg2, %arg1 : i32, i32
  }
  func.func @transform_2(%arg0: i32, %arg1: i32, %arg2: i32) -> (i32, i32) {
    %c0_i32 = arith.constant 0 : i32
    return %arg0, %arg1 : i32, i32
  }
}

</mosaic_0001>

<bundles_post_ra>
// kernel: renyi_entropy_loss.5
= control target key start
LH: loop header
LB: loop body
LE: loop exit
PB: predicated region body
PF: predicated region fallthrough
CT: control target
= control target key end

     0   :  { %s571_s1 = inlined_call_operand.vmem [shape: f32[128,128], index: 1, kind: input, shape index: {}, may-alias: {0,1}]   ;;  %s572_s0 = inlined_call_operand.vmem [shape: f32[128,128], index: 0, kind: input, shape index: {}, may-alias: {0,1}]   ;;  %s573_s2 = inlined_call_operand.vmem [shape: f32[128,128], index: 2, kind: output, shape index: {}]  }
   0x1   :  { %v78_v0 = vld [vmem:[%s571_s1 + $0x78] sm:$0xff]  ;;  %v77_v1 = vld [vmem:[%s571_s1 + $0x70] sm:$0xff]  ;;  %v76_v2 = vld [vmem:[%s571_s1 + $0x68] sm:$0xff] }
   0x2   :  { %324 = vmatprep.subr.mxu0 %v78_v0  ;;  %380 = vmatprep.subr.mxu1 %v78_v0  ;;  %v75_v3 = vld [vmem:[%s571_s1 + $0x60] sm:$0xff]  ;;  %v74_v4 = vld [vmem:[%s571_s1 + $0x58] sm:$0xff]  ;;  %v73_v5 = vld [vmem:[%s571_s1 + $0x50] sm:$0xff] }
   0x3   :  { %325 = vmatpush3.msra.mxu0 %v78_v0  ;;  %396 = vmatpush3.msra.mxu1 %v78_v0  ;;  %v72_v6 = vld [vmem:[%s571_s1 + $0x48] sm:$0xff]  ;;  %v71_v7 = vld [vmem:[%s571_s1 + $0x40] sm:$0xff]  ;;  %v70_v8 = vld [vmem:[%s571_s1 + $0x38] sm:$0xff] }
   0x4   :  { %326 = vmatprep.subr.mxu0 %v77_v1  ;;  %381 = vmatprep.subr.mxu1 %v77_v1  ;;  %v69_v9 = vld [vmem:[%s571_s1 + $0x30] sm:$0xff]  ;;  %v68_v10 = vld [vmem:[%s571_s1 + $0x28] sm:$0xff]  ;;  %v67_v11 = vld [vmem:[%s571_s1 + $0x20] sm:$0xff] }
   0x5   :  { %327 = vmatpush3.msra.mxu0 %v77_v1  ;;  %397 = vmatpush3.msra.mxu1 %v77_v1  ;;  %v66_v12 = vld [vmem:[%s571_s1 + $0x18] sm:$0xff]  ;;  %v65_v13 = vld [vmem:[%s571_s1 + $0x10] sm:$0xff]  ;;  %v64_v14 = vld [vmem:[%s571_s1 + $0x8] sm:$0xff] }
   0x6   :  { %328 = vmatprep.subr.mxu0 %v76_v2  ;;  %382 = vmatprep.subr.mxu1 %v76_v2  ;;  %v63_v15 = vld [vmem:[%s571_s1] sm:$0xff]  ;;  %v48_v18 = vld [vmem:[%s572_s0 + $0x8] sm:$0xff]  ;;  %v49_v20 = vld [vmem:[%s572_s0 + $0x10] sm:$0xff] }
   0x7   :  { %329 = vmatpush3.msra.mxu0 %v76_v2  ;;  %398 = vmatpush3.msra.mxu1 %v76_v2  ;;  %v47_v16 = vld [vmem:[%s572_s0] sm:$0xff]  ;;  %v56_v19 = vld [vmem:[%s572_s0 + $0x48] sm:$0xff]  ;;  %v57_v21 = vld [vmem:[%s572_s0 + $0x50] sm:$0xff] }
   0x8   :  { %330 = vmatprep.subr.mxu0 %v75_v3  ;;  %383 = vmatprep.subr.mxu1 %v75_v3  ;;  %v55_v17 = vld [vmem:[%s572_s0 + $0x40] sm:$0xff]  ;;  %v50_v22 = vld [vmem:[%s572_s0 + $0x18] sm:$0xff]  ;;  %v52_v26 = vld [vmem:[%s572_s0 + $0x28] sm:$0xff] }
   0x9   :  { %331 = vmatpush3.msra.mxu0 %v75_v3  ;;  %399 = vmatpush3.msra.mxu1 %v75_v3  ;;  %v58_v23 = vld [vmem:[%s572_s0 + $0x58] sm:$0xff]  ;;  %v51_v24 = vld [vmem:[%s572_s0 + $0x20] sm:$0xff]  ;;  %v60_v27 = vld [vmem:[%s572_s0 + $0x68] sm:$0xff] }
   0xa   :  { %332 = vmatprep.subr.mxu0 %v74_v4  ;;  %384 = vmatprep.subr.mxu1 %v74_v4  ;;  %v59_v25 = vld [vmem:[%s572_s0 + $0x60] sm:$0xff]  ;;  %v53_v28 = vld [vmem:[%s572_s0 + $0x30] sm:$0xff]  ;;  %v54_v30 = vld [vmem:[%s572_s0 + $0x38] sm:$0xff] }
   0xb   :  { %333 = vmatpush3.msra.mxu0 %v74_v4  ;;  %400 = vmatpush3.msra.mxu1 %v74_v4  ;;  %v61_v29 = vld [vmem:[%s572_s0 + $0x70] sm:$0xff]  ;;  %v62_v31 = vld [vmem:[%s572_s0 + $0x78] sm:$0xff] }
   0xc   :  { %334 = vmatprep.subr.mxu0 %v73_v5  ;;  %385 = vmatprep.subr.mxu1 %v73_v5 }
   0xd   :  { %335 = vmatpush3.msra.mxu0 %v73_v5  ;;  %401 = vmatpush3.msra.mxu1 %v73_v5 }
   0xe   :  { %336 = vmatprep.subr.mxu0 %v72_v6  ;;  %386 = vmatprep.subr.mxu1 %v72_v6 }
   0xf   :  { %337 = vmatpush3.msra.mxu0 %v72_v6  ;;  %402 = vmatpush3.msra.mxu1 %v72_v6 }
  0x10   :  { %338 = vmatprep.subr.mxu0 %v71_v7  ;;  %387 = vmatprep.subr.mxu1 %v71_v7 }
  0x11   :  { %339 = vmatpush3.msra.mxu0 %v71_v7  ;;  %403 = vmatpush3.msra.mxu1 %v71_v7 }
  0x12   :  { %340 = vmatprep.subr.mxu0 %v70_v8  ;;  %388 = vmatprep.subr.mxu1 %v70_v8 }
  0x13   :  { %341 = vmatpush3.msra.mxu0 %v70_v8  ;;  %404 = vmatpush3.msra.mxu1 %v70_v8 }
  0x14   :  { %342 = vmatprep.subr.mxu0 %v69_v9  ;;  %389 = vmatprep.subr.mxu1 %v69_v9 }
  0x15   :  { %343 = vmatpush3.msra.mxu0 %v69_v9  ;;  %405 = vmatpush3.msra.mxu1 %v69_v9 }
  0x16   :  { %344 = vmatprep.subr.mxu0 %v68_v10  ;;  %390 = vmatprep.subr.mxu1 %v68_v10 }
  0x17   :  { %345 = vmatpush3.msra.mxu0 %v68_v10  ;;  %406 = vmatpush3.msra.mxu1 %v68_v10 }
  0x18   :  { %346 = vmatprep.subr.mxu0 %v67_v11  ;;  %391 = vmatprep.subr.mxu1 %v67_v11 }
  0x19   :  { %347 = vmatpush3.msra.mxu0 %v67_v11  ;;  %407 = vmatpush3.msra.mxu1 %v67_v11 }
  0x1a   :  { %348 = vmatprep.subr.mxu0 %v66_v12  ;;  %392 = vmatprep.subr.mxu1 %v66_v12 }
  0x1b   :  { %349 = vmatpush3.msra.mxu0 %v66_v12  ;;  %408 = vmatpush3.msra.mxu1 %v66_v12 }
  0x1c   :  { %350 = vmatprep.subr.mxu0 %v65_v13  ;;  %393 = vmatprep.subr.mxu1 %v65_v13 }
  0x1d   :  { %351 = vmatpush3.msra.mxu0 %v65_v13  ;;  %409 = vmatpush3.msra.mxu1 %v65_v13 }
  0x1e   :  { %352 = vmatprep.subr.mxu0 %v64_v14  ;;  %394 = vmatprep.subr.mxu1 %v64_v14 }
  0x1f   :  { %353 = vmatpush3.msra.mxu0 %v64_v14  ;;  %410 = vmatpush3.msra.mxu1 %v64_v14 }
  0x20   :  { %354 = vmatprep.subr.mxu0 %v63_v15  ;;  %395 = vmatprep.subr.mxu1 %v63_v15 }
  0x21   :  { %355 = vmatpush3.msra.mxu0 %v63_v15  ;;  %411 = vmatpush3.msra.mxu1 %v63_v15 }
  0x22   :  { %356 = vmatprep.mubr.f32.mxu0 %v47_v16  ;;  %368 = vmatprep.mubr.f32.mxu1 %v55_v17 }
  0x23   :  { %357 = vmatmul.mubr.f32.vlgmr.msra.gmra.mxu0 %v48_v18  ;;  %369 = vmatmul.mubr.f32.vlgmr.msra.gmra.mxu1 %v56_v19 }
  0x24   :  { %359 = vmatprep.mubr.f32.mxu0 %v49_v20  ;;  %371 = vmatprep.mubr.f32.mxu1 %v57_v21 }
  0x27   :  { %360 = vmatmul.mubr.f32.gmra.mxu0 %v50_v22  ;;  %372 = vmatmul.mubr.f32.gmra.mxu1 %v58_v23 }
  0x28   :  { %362 = vmatprep.mubr.f32.mxu0 %v51_v24  ;;  %374 = vmatprep.mubr.f32.mxu1 %v59_v25 }
  0x2b   :  { %363 = vmatmul.mubr.f32.gmra.mxu0 %v52_v26  ;;  %375 = vmatmul.mubr.f32.gmra.mxu1 %v60_v27 }
  0x2c   :  { %365 = vmatprep.mubr.f32.mxu0 %v53_v28  ;;  %377 = vmatprep.mubr.f32.mxu1 %v61_v29 }
  0x2f   :  { %366 = vmatmul.mubr.f32.gmra.mxu0 %v54_v30  ;;  %378 = vmatmul.mubr.f32.gmra.mxu1 %v62_v31 }
  0xe3   :  { %v358_v32 = vpop.f32.mrf.mxu0  ;;  %v370_v33 = vpop.f32.mrf.mxu1 }
  0xe4   :  { %273 = vst [vmem:[%s573_s2 + $0x8] sm:$0xff] %v358_v32  ;;  %281 = vst [vmem:[%s573_s2 + $0x48] sm:$0xff] %v370_v33 }
  0xe5   :  { %v145_v34 = vpop.f32.mrf.mxu0  ;;  %v185_v35 = vpop.f32.mrf.mxu1 }
  0xe6   :  { %272 = vst [vmem:[%s573_s2] sm:$0xff] %v145_v34  ;;  %280 = vst [vmem:[%s573_s2 + $0x40] sm:$0xff] %v185_v35 }
  0xe7   :  { %v361_v36 = vpop.f32.mrf.mxu0  ;;  %v373_v37 = vpop.f32.mrf.mxu1 }
  0xe8   :  { %275 = vst [vmem:[%s573_s2 + $0x18] sm:$0xff] %v361_v36  ;;  %283 = vst [vmem:[%s573_s2 + $0x58] sm:$0xff] %v373_v37 }
  0xe9   :  { %v155_v38 = vpop.f32.mrf.mxu0  ;;  %v195_v39 = vpop.f32.mrf.mxu1 }
  0xea   :  { %274 = vst [vmem:[%s573_s2 + $0x10] sm:$0xff] %v155_v38  ;;  %282 = vst [vmem:[%s573_s2 + $0x50] sm:$0xff] %v195_v39 }
  0xeb   :  { %v364_v40 = vpop.f32.mrf.mxu0  ;;  %v376_v41 = vpop.f32.mrf.mxu1 }
  0xec   :  { %277 = vst [vmem:[%s573_s2 + $0x28] sm:$0xff] %v364_v40  ;;  %285 = vst [vmem:[%s573_s2 + $0x68] sm:$0xff] %v376_v41 }
  0xed   :  { %v165_v42 = vpop.f32.mrf.mxu0  ;;  %v205_v43 = vpop.f32.mrf.mxu1 }
  0xee   :  { %276 = vst [vmem:[%s573_s2 + $0x20] sm:$0xff] %v165_v42  ;;  %284 = vst [vmem:[%s573_s2 + $0x60] sm:$0xff] %v205_v43 }
  0xef   :  { %v367_v44 = vpop.f32.mrf.mxu0  ;;  %v379_v45 = vpop.f32.mrf.mxu1 }
  0xf0   :  { %279 = vst [vmem:[%s573_s2 + $0x38] sm:$0xff] %v367_v44  ;;  %287 = vst [vmem:[%s573_s2 + $0x78] sm:$0xff] %v379_v45 }
  0xf1   :  { %v175_v46 = vpop.f32.mrf.mxu0  ;;  %v215_v47 = vpop.f32.mrf.mxu1 }
  0xf2   :  { %278 = vst [vmem:[%s573_s2 + $0x30] sm:$0xff] %v175_v46  ;;  %286 = vst [vmem:[%s573_s2 + $0x70] sm:$0xff] %v215_v47 }

// kernel: renyi_entropy_loss.4
= control target key start
LH: loop header
LB: loop body
LE: loop exit
PB: predicated region body
PF: predicated region fallthrough
CT: control target
= control target key end

     0   :  { %v520_v32 = vmov 0.0   ;;  %v309_v61 = vlaneseq  ;;  %s696_s2 = inlined_call_operand.vmem [shape: f32[128,128], index: 2, kind: input, shape index: {}]   ;;  %s697_s1 = inlined_call_operand.vmem [shape: f32[128,128], index: 1, kind: input, shape index: {}]   ;;  %s698_s3 = inlined_call_operand.vmem [shape: f32[128,128], index: 3, kind: output, shape index: {}]   ;;  %s699_s0 = inlined_call_operand.<no memory space> [shape: f32[1,1], index: 0, kind: input, shape index: {}]  }
   0x1   :  { %v46_v0 = vld [vmem:[%s696_s2 + $0x78] sm:$0xff]  ;;  %v45_v1 = vld [vmem:[%s696_s2 + $0x70] sm:$0xff]  ;;  %v44_v2 = vld [vmem:[%s696_s2 + $0x68] sm:$0xff]  ;;  %371 = vst [vmem:[%s698_s3 + $0x40] sm:$0xff] %v520_v32 }
   0x2   :  { %415 = vmatprep.subr.mxu0 %v46_v0  ;;  %471 = vmatprep.subr.mxu1 %v46_v0  ;;  %v15_v3 = vld [vmem:[%s697_s1] sm:$0xff]  ;;  %v42_v6 = vld [vmem:[%s696_s2 + $0x58] sm:$0xff]  ;;  %v41_v7 = vld [vmem:[%s696_s2 + $0x50] sm:$0xff]  ;;  %372 = vst [vmem:[%s698_s3 + $0x48] sm:$0xff] %v520_v32 }
   0x3   :  { %416 = vmatpush3.xpose.msra.mxu0 %v46_v0  ;;  %487 = vmatpush3.xpose.msra.mxu1 %v46_v0  ;;  %v43_v4 = vld [vmem:[%s696_s2 + $0x60] sm:$0xff]  ;;  %v40_v8 = vld [vmem:[%s696_s2 + $0x48] sm:$0xff]  ;;  %v38_v10 = vld [vmem:[%s696_s2 + $0x38] sm:$0xff]  ;;  %373 = vst [vmem:[%s698_s3 + $0x50] sm:$0xff] %v520_v32 }
   0x4   :  { %417 = vmatprep.subr.mxu0 %v45_v1  ;;  %472 = vmatprep.subr.mxu1 %v45_v1  ;;  %v23_v5 = vld [vmem:[%s697_s1 + $0x40] sm:$0xff]  ;;  %v37_v11 = vld [vmem:[%s696_s2 + $0x30] sm:$0xff]  ;;  %v36_v12 = vld [vmem:[%s696_s2 + $0x28] sm:$0xff]  ;;  %374 = vst [vmem:[%s698_s3 + $0x58] sm:$0xff] %v520_v32 }
   0x5   :  { %447 = vmatprep.mubr.f32.mxu0 %v15_v3  ;;  %459 = vmatprep.mubr.f32.mxu1 %v23_v5  ;;  %v39_v9 = vld [vmem:[%s696_s2 + $0x40] sm:$0xff]  ;;  %v34_v14 = vld [vmem:[%s696_s2 + $0x18] sm:$0xff]  ;;  %v33_v15 = vld [vmem:[%s696_s2 + $0x10] sm:$0xff]  ;;  %375 = vst [vmem:[%s698_s3 + $0x60] sm:$0xff] %v520_v32 }
   0x6   :  { %v35_v13 = vld [vmem:[%s696_s2 + $0x20] sm:$0xff]  ;;  %v32_v16 = vld [vmem:[%s696_s2 + $0x8] sm:$0xff]  ;;  %v17_v20 = vld [vmem:[%s697_s1 + $0x10] sm:$0xff]  ;;  %376 = vst [vmem:[%s698_s3 + $0x68] sm:$0xff] %v520_v32 }
   0x7   :  { %418 = vmatpush3.xpose.msra.mxu0 %v45_v1  ;;  %488 = vmatpush3.xpose.msra.mxu1 %v45_v1  ;;  %v31_v17 = vld [vmem:[%s696_s2] sm:$0xff]  ;;  %v16_v18 = vld [vmem:[%s697_s1 + $0x8] sm:$0xff]  ;;  %v25_v21 = vld [vmem:[%s697_s1 + $0x50] sm:$0xff]  ;;  %377 = vst [vmem:[%s698_s3 + $0x70] sm:$0xff] %v520_v32 }
   0x8   :  { %419 = vmatprep.subr.mxu0 %v44_v2  ;;  %473 = vmatprep.subr.mxu1 %v44_v2  ;;  %v24_v19 = vld [vmem:[%s697_s1 + $0x48] sm:$0xff]  ;;  %v18_v22 = vld [vmem:[%s697_s1 + $0x18] sm:$0xff]  ;;  %v19_v24 = vld [vmem:[%s697_s1 + $0x20] sm:$0xff]  ;;  %378 = vst [vmem:[%s698_s3 + $0x78] sm:$0xff] %v520_v32 }
   0x9   :  { %v26_v23 = vld [vmem:[%s697_s1 + $0x58] sm:$0xff]  ;;  %v27_v25 = vld [vmem:[%s697_s1 + $0x60] sm:$0xff]  ;;  %v20_v26 = vld [vmem:[%s697_s1 + $0x28] sm:$0xff]  ;;  %v209_v34 = vstv %s699_s0 }
   0xa   :  { %v28_v27 = vld [vmem:[%s697_s1 + $0x68] sm:$0xff]  ;;  %v21_v28 = vld [vmem:[%s697_s1 + $0x30] sm:$0xff]  ;;  %v22_v30 = vld [vmem:[%s697_s1 + $0x38] sm:$0xff] }
   0xb   :  { %420 = vmatpush3.xpose.msra.mxu0 %v44_v2  ;;  %489 = vmatpush3.xpose.msra.mxu1 %v44_v2  ;;  %v29_v29 = vld [vmem:[%s697_s1 + $0x70] sm:$0xff]  ;;  %v30_v31 = vld [vmem:[%s697_s1 + $0x78] sm:$0xff] }
   0xc   :  { %421 = vmatprep.subr.mxu0 %v43_v4  ;;  %474 = vmatprep.subr.mxu1 %v43_v4 }
   0xf   :  { %422 = vmatpush3.xpose.msra.mxu0 %v43_v4  ;;  %490 = vmatpush3.xpose.msra.mxu1 %v43_v4 }
  0x10   :  { %423 = vmatprep.subr.mxu0 %v42_v6  ;;  %475 = vmatprep.subr.mxu1 %v42_v6 }
  0x13   :  { %424 = vmatpush3.xpose.msra.mxu0 %v42_v6  ;;  %491 = vmatpush3.xpose.msra.mxu1 %v42_v6 }
  0x14   :  { %425 = vmatprep.subr.mxu0 %v41_v7  ;;  %476 = vmatprep.subr.mxu1 %v41_v7 }
  0x17   :  { %426 = vmatpush3.xpose.msra.mxu0 %v41_v7  ;;  %492 = vmatpush3.xpose.msra.mxu1 %v41_v7 }
  0x18   :  { %427 = vmatprep.subr.mxu0 %v40_v8  ;;  %477 = vmatprep.subr.mxu1 %v40_v8 }
  0x1b   :  { %428 = vmatpush3.xpose.msra.mxu0 %v40_v8  ;;  %493 = vmatpush3.xpose.msra.mxu1 %v40_v8  ;;  %v310_v8 = vand.u32 127, %v309_v61 }
  0x1c   :  { %429 = vmatprep.subr.mxu0 %v39_v9  ;;  %478 = vmatprep.subr.mxu1 %v39_v9 }
  0x1d   :  { %vm330_vm0 = vcmp.lt.s32.totalorder %v310_v8, 64 }
  0x1f   :  { %430 = vmatpush3.xpose.msra.mxu0 %v39_v9  ;;  %494 = vmatpush3.xpose.msra.mxu1 %v39_v9 }
  0x20   :  { %431 = vmatprep.subr.mxu0 %v38_v10  ;;  %479 = vmatprep.subr.mxu1 %v38_v10 }
  0x23   :  { %432 = vmatpush3.xpose.msra.mxu0 %v38_v10  ;;  %495 = vmatpush3.xpose.msra.mxu1 %v38_v10 }
  0x24   :  { %433 = vmatprep.subr.mxu0 %v37_v11  ;;  %480 = vmatprep.subr.mxu1 %v37_v11 }
  0x27   :  { %434 = vmatpush3.xpose.msra.mxu0 %v37_v11  ;;  %496 = vmatpush3.xpose.msra.mxu1 %v37_v11 }
  0x28   :  { %435 = vmatprep.subr.mxu0 %v36_v12  ;;  %481 = vmatprep.subr.mxu1 %v36_v12 }
  0x2b   :  { %436 = vmatpush3.xpose.msra.mxu0 %v36_v12  ;;  %497 = vmatpush3.xpose.msra.mxu1 %v36_v12 }
  0x2c   :  { %437 = vmatprep.subr.mxu0 %v35_v13  ;;  %482 = vmatprep.subr.mxu1 %v35_v13 }
  0x2f   :  { %438 = vmatpush3.xpose.msra.mxu0 %v35_v13  ;;  %498 = vmatpush3.xpose.msra.mxu1 %v35_v13 }
  0x30   :  { %439 = vmatprep.subr.mxu0 %v34_v14  ;;  %483 = vmatprep.subr.mxu1 %v34_v14 }
  0x33   :  { %440 = vmatpush3.xpose.msra.mxu0 %v34_v14  ;;  %499 = vmatpush3.xpose.msra.mxu1 %v34_v14 }
  0x34   :  { %441 = vmatprep.subr.mxu0 %v33_v15  ;;  %484 = vmatprep.subr.mxu1 %v33_v15 }
  0x37   :  { %442 = vmatpush3.xpose.msra.mxu0 %v33_v15  ;;  %500 = vmatpush3.xpose.msra.mxu1 %v33_v15 }
  0x38   :  { %443 = vmatprep.subr.mxu0 %v32_v16  ;;  %485 = vmatprep.subr.mxu1 %v32_v16 }
  0x3b   :  { %444 = vmatpush3.xpose.msra.mxu0 %v32_v16  ;;  %501 = vmatpush3.xpose.msra.mxu1 %v32_v16 }
  0x3c   :  { %445 = vmatprep.subr.mxu0 %v31_v17  ;;  %486 = vmatprep.subr.mxu1 %v31_v17 }
  0x3f   :  { %446 = vmatpush3.xpose.msra.mxu0 %v31_v17  ;;  %502 = vmatpush3.xpose.msra.mxu1 %v31_v17 }
  0x42   :  { %448 = vmatmul.mubr.f32.vlgmr.msra.gmra.mxu0 %v16_v18  ;;  %460 = vmatmul.mubr.f32.vlgmr.msra.gmra.mxu1 %v24_v19 }
  0x43   :  { %450 = vmatprep.mubr.f32.mxu0 %v17_v20  ;;  %462 = vmatprep.mubr.f32.mxu1 %v25_v21 }
  0x46   :  { %451 = vmatmul.mubr.f32.gmra.mxu0 %v18_v22  ;;  %463 = vmatmul.mubr.f32.gmra.mxu1 %v26_v23 }
  0x47   :  { %453 = vmatprep.mubr.f32.mxu0 %v19_v24  ;;  %465 = vmatprep.mubr.f32.mxu1 %v27_v25 }
  0x4a   :  { %454 = vmatmul.mubr.f32.gmra.mxu0 %v20_v26  ;;  %466 = vmatmul.mubr.f32.gmra.mxu1 %v28_v27 }
  0x4b   :  { %456 = vmatprep.mubr.f32.mxu0 %v21_v28  ;;  %468 = vmatprep.mubr.f32.mxu1 %v29_v29 }
  0x4e   :  { %457 = vmatmul.mubr.f32.gmra.mxu0 %v22_v30  ;;  %469 = vmatmul.mubr.f32.gmra.mxu1 %v30_v31 }
 0x102   :  { %v449_v33 = vpop.f32.mrf.mxu0  ;;  %v461_v35 = vpop.f32.mrf.mxu1 }
 0x103   :  { %v193_v36 = vsub.f32 0.0, %v449_v33 }
 0x104   :  { %v113_v37 = vpop.f32.mrf.mxu0  ;;  %v153_v38 = vpop.f32.mrf.mxu1 }
 0x105   :  { %v211_v39 = vmul.f32 %v209_v34, %v193_v36  ;;  %v192_v40 = vsub.f32 0.0, %v113_v37 }
 0x106   :  { %v452_v41 = vpop.f32.mrf.mxu0  ;;  %v464_v42 = vpop.f32.mrf.mxu1 }
 0x107   :  { %v228_v43 = vmul.f32 1.442695, %v211_v39  ;;  %v210_v44 = vmul.f32 %v209_v34, %v192_v40  ;;  %v195_v45 = vsub.f32 0.0, %v452_v41 }
 0x108   :  { %v123_v46 = vpop.f32.mrf.mxu0  ;;  %v163_v47 = vpop.f32.mrf.mxu1 }
 0x109   :  { %504 = vpow2.f32 %v228_v43  ;;  %v226_v48 = vmul.f32 1.442695, %v210_v44  ;;  %v213_v49 = vmul.f32 %v209_v34, %v195_v45  ;;  %v194_v50 = vsub.f32 0.0, %v123_v46 }
 0x10a   :  { %v455_v51 = vpop.f32.mrf.mxu0  ;;  %v467_v52 = vpop.f32.mrf.mxu1 }
 0x10b   :  { %506 = vpow2.f32 %v226_v48  ;;  %v232_v53 = vmul.f32 1.442695, %v213_v49  ;;  %v212_v54 = vmul.f32 %v209_v34, %v194_v50  ;;  %v197_v55 = vsub.f32 0.0, %v455_v51 }
 0x10c   :  { %v133_v56 = vpop.f32.mrf.mxu0  ;;  %v173_v57 = vpop.f32.mrf.mxu1 }
 0x10d   :  { %508 = vpow2.f32 %v232_v53  ;;  %v230_v58 = vmul.f32 1.442695, %v212_v54  ;;  %v215_v59 = vmul.f32 %v209_v34, %v197_v55  ;;  %v196_v60 = vsub.f32 0.0, %v133_v56 }
 0x10e   :  { %v458_v62 = vpop.f32.mrf.mxu0  ;;  %v470_v63 = vpop.f32.mrf.mxu1 }
 0x10f   :  { %510 = vpow2.f32 %v230_v58  ;;  %v236_v0 = vmul.f32 1.442695, %v215_v59  ;;  %v214_v1 = vmul.f32 %v209_v34, %v196_v60  ;;  %v199_v2 = vsub.f32 0.0, %v458_v62 }
 0x110   :  { %v143_v3 = vpop.f32.mrf.mxu0  ;;  %v183_v4 = vpop.f32.mrf.mxu1 }
 0x111   :  { %512 = vpow2.f32 %v236_v0  ;;  %v234_v5 = vmul.f32 1.442695, %v214_v1  ;;  %v217_v6 = vmul.f32 %v209_v34, %v199_v2  ;;  %v198_v7 = vsub.f32 0.0, %v143_v3 }
 0x113   :  { %514 = vpow2.f32 %v234_v5  ;;  %v240_v9 = vmul.f32 1.442695, %v217_v6  ;;  %v216_v10 = vmul.f32 %v209_v34, %v198_v7 }
 0x115   :  { %516 = vpow2.f32 %v240_v9  ;;  %v238_v11 = vmul.f32 1.442695, %v216_v10 }
 0x116   :  { %v505_v12 = vpop.eup %504 }
 0x117   :  { %v259_v13 = vmul.f32 0.015625, %v505_v12  ;;  %518 = vpow2.f32 %v238_v11 }
 0x118   :  { %v507_v14 = vpop.eup %506 }
 0x119   :  { %v348_v15 = vsel %vm330_vm0, %v259_v13, 0.0  ;;  %v258_v16 = vmul.f32 0.015625, %v507_v14 }
 0x11a   :  { %v509_v17 = vpop.eup %508  ;;  %364 = vst [vmem:[%s698_s3 + $0x8] sm:$0xff] %v348_v15 }
 0x11b   :  { %v347_v18 = vsel %vm330_vm0, %v258_v16, 0.0  ;;  %v261_v19 = vmul.f32 0.015625, %v509_v17 }
 0x11c   :  { %v511_v20 = vpop.eup %510  ;;  %363 = vst [vmem:[%s698_s3] sm:$0xff] %v347_v18 }
 0x11d   :  { %v350_v21 = vsel %vm330_vm0, %v261_v19, 0.0  ;;  %v260_v22 = vmul.f32 0.015625, %v511_v20 }
 0x11e   :  { %v513_v23 = vpop.eup %512  ;;  %366 = vst [vmem:[%s698_s3 + $0x18] sm:$0xff] %v350_v21 }
 0x11f   :  { %v349_v24 = vsel %vm330_vm0, %v260_v22, 0.0  ;;  %v263_v25 = vmul.f32 0.015625, %v513_v23 }
 0x120   :  { %v515_v26 = vpop.eup %514  ;;  %365 = vst [vmem:[%s698_s3 + $0x10] sm:$0xff] %v349_v24 }
 0x121   :  { %v352_v27 = vsel %vm330_vm0, %v263_v25, 0.0  ;;  %v262_v28 = vmul.f32 0.015625, %v515_v26 }
 0x122   :  { %v517_v29 = vpop.eup %516  ;;  %368 = vst [vmem:[%s698_s3 + $0x28] sm:$0xff] %v352_v27 }
 0x123   :  { %v351_v30 = vsel %vm330_vm0, %v262_v28, 0.0  ;;  %v265_v31 = vmul.f32 0.015625, %v517_v29 }
 0x124   :  { %v519_v32 = vpop.eup %518  ;;  %367 = vst [vmem:[%s698_s3 + $0x20] sm:$0xff] %v351_v30 }
 0x125   :  { %v354_v33 = vsel %vm330_vm0, %v265_v31, 0.0  ;;  %v264_v34 = vmul.f32 0.015625, %v519_v32 }
 0x126   :  { %370 = vst [vmem:[%s698_s3 + $0x38] sm:$0xff] %v354_v33 }
 0x127   :  { %v353_v35 = vsel %vm330_vm0, %v264_v34, 0.0 }
 0x128   :  { %369 = vst [vmem:[%s698_s3 + $0x30] sm:$0xff] %v353_v35 }

</bundles_post_ra>
